<compile_context>
chip_gen: v7x
topology: tpu7x:2x2x1
jax: 0.10.0
libtpu: 0.0.40
codegen_flags: <defaults>
</compile_context>

<pallas_src>
import jax
import jax.numpy as jnp
from jax.experimental import pallas as pl
from jax.experimental.pallas import tpu as pltpu


_NEG = -1e30  # finite "minus infinity" for class-lane padding (0 * _NEG == 0)


def _round_up(x, m):
    return ((x + m - 1) // m) * m


# ----------------------------------------------------------------------------
# Pallas kernel: per-(term, row-block) masked cross-entropy partial sums
# ----------------------------------------------------------------------------
def _ce_partial_kernel(logits_ref, labels_ref, sum_ref, cnt_ref):
    # logits_ref: (1, ROW_TILE, C_pad) native dtype (bf16/f32)
    # labels_ref: (1, ROW_TILE, 1) int32; -1 marks invalid / padded tokens
    x = logits_ref[0].astype(jnp.float32)                 # (R, Cp) f32
    lab = labels_ref[0]                                   # (R, 1)  int32
    msk = (lab >= 0).astype(jnp.float32)                  # (R, 1)  f32

    # numerically-stable log-sum-exp over the class (lane) axis
    m = jnp.max(x, axis=-1, keepdims=True)                # (R, 1)
    lse = jnp.log(jnp.sum(jnp.exp(x - m), axis=-1, keepdims=True)) + m

    # label-logit gather fused into the same pass (no f32 one-hot temporary);
    # padded lanes / sentinel labels never match the iota.
    cls = jax.lax.broadcasted_iota(jnp.int32, x.shape, 1)  # (R, Cp)
    tgt = jnp.sum(jnp.where(cls == lab, x, 0.0), axis=-1, keepdims=True)

    ce = (lse - tgt) * msk                                 # (R, 1)
    s = jnp.sum(ce)
    c = jnp.sum(msk)

    # lane-dense, (8,128)-aligned partial outputs -> unmasked full-width stores
    sum_ref[...] = jnp.full(sum_ref.shape, s, jnp.float32)
    cnt_ref[...] = jnp.full(cnt_ref.shape, c, jnp.float32)


# ----------------------------------------------------------------------------
# Wrapper: mask formulation of flatten_label / _flatten + fused launch
# ----------------------------------------------------------------------------
def _length_mask(target):
    """valid(t) <=> no 0 strictly before position t (inclusive of first 0)."""
    zeros = (target == 0).astype(jnp.int32)
    excl = jnp.cumsum(zeros, axis=1) - zeros
    return excl == 0


def _choose_row_tile(rows, c_pad, itemsize):
    # Keep a double-buffered logits tile well inside even v5e's 16 MiB scoped
    # VMEM (and v7x's 64 MiB physical): budget ~2 MiB per logits buffer.
    budget = 2 * 1024 * 1024
    cap = max(8, ((budget // (c_pad * itemsize)) // 8) * 8)
    tile = min(512, cap)
    if rows <= tile:
        return _round_up(max(rows, 1), 8)
    return tile


def fused_masked_ce_sums(logits_list, target_list):
    """Returns (loss_sums, token_counts), each shape (n_terms,) float32."""
    nt = len(logits_list)
    B, T, C = logits_list[0].shape
    R = B * T
    C_pad = _round_up(C, 128)
    dtype = logits_list[0].dtype
    row_tile = _choose_row_tile(R, C_pad, jnp.dtype(dtype).itemsize)
    R_pad = _round_up(R, row_tile)
    nb = R_pad // row_tile

    lg, lb = [], []
    for logit, tgt in zip(logits_list, target_list):
        x2 = logit.reshape(R, C)
        # pad class lanes (and spare rows) with a large negative: contributes
        # exp(...)=0 to the LSE and never matches the label iota.
        x2 = jnp.pad(x2, ((0, R_pad - R), (0, C_pad - C)), constant_values=_NEG)
        lg.append(x2)
        t = tgt.astype(jnp.int32)
        t = jnp.where(_length_mask(t), t, -1).reshape(R)   # -1 => invalid token
        t = jnp.pad(t, (0, R_pad - R), constant_values=-1)
        lb.append(t.reshape(R_pad, 1))

    logits_all = jnp.stack(lg)            # (nt, R_pad, C_pad), native dtype
    labels_all = jnp.stack(lb)            # (nt, R_pad, 1) int32

    sums, cnts = pl.pallas_call(
        _ce_partial_kernel,
        out_shape=(
            jax.ShapeDtypeStruct((nt, nb, 8, 128), jnp.float32),
            jax.ShapeDtypeStruct((nt, nb, 8, 128), jnp.float32),
        ),
        grid_spec=pltpu.PrefetchScalarGridSpec(
            num_scalar_prefetch=0,
            grid=(nt, nb),
            in_specs=[
                pl.BlockSpec((1, row_tile, C_pad), lambda t, b: (t, b, 0)),
                pl.BlockSpec((1, row_tile, 1), lambda t, b: (t, b, 0)),
            ],
            out_specs=(
                pl.BlockSpec((1, 1, 8, 128), lambda t, b: (t, b, 0, 0)),
                pl.BlockSpec((1, 1, 8, 128), lambda t, b: (t, b, 0, 0)),
            ),
        ),
        compiler_params=pltpu.CompilerParams(
            dimension_semantics=("parallel", "parallel"),
        ),
    )(logits_all, labels_all)

    loss_sums = jnp.sum(sums[:, :, 0, 0], axis=1)   # (nt,)
    tok_cnts = jnp.sum(cnts[:, :, 0, 0], axis=1)    # (nt,)
    return loss_sums, tok_cnts


def visionlan_loss(pred, batch, training_step="LA", ratio_res=0.5, ratio_sub=0.5):
    assert training_step in ("LF_1", "LF_2", "LA")
    text_pre, text_rem, text_mas, _ = pred
    if training_step == "LF_1":
        sums, cnts = fused_masked_ce_sums([text_pre], [batch[1]])
        loss = sums[0] / cnts[0]
    else:
        sums, cnts = fused_masked_ce_sums(
            [text_pre, text_rem, text_mas], [batch[1], batch[2], batch[3]]
        )
        per_term = sums / cnts  # NaN if a term has zero valid tokens (matches torch)
        loss = per_term[0] + ratio_res * per_term[1] + ratio_sub * per_term[2]
    return {"loss": loss}


# ----------------------------------------------------------------------------
# Pure-JAX reference (verification only)
# ----------------------------------------------------------------------------
def _ref_masked_ce(logits, target):
    mask = _length_mask(target).astype(jnp.float32)
    logp = jax.nn.log_softmax(logits.astype(jnp.float32), axis=-1)
    nll = -jnp.take_along_axis(
        logp, target[..., None].astype(jnp.int32), axis=-1
    )[..., 0]
    return jnp.sum(nll * mask) / jnp.sum(mask)


def _ref_visionlan_loss(pred, batch, ratio_res=0.5, ratio_sub=0.5):
    text_pre, text_rem, text_mas, _ = pred
    return (
        _ref_masked_ce(text_pre, batch[1])
        + ratio_res * _ref_masked_ce(text_rem, batch[2])
        + ratio_sub * _ref_masked_ce(text_mas, batch[3])
    )


if __name__ == "__main__":
    B, T, C = 2, 8, 32
    key = jax.random.PRNGKey(0)
    k1, k2, k3, k4, k5, k6 = jax.random.split(key, 6)

    text_pre = jax.random.normal(k1, (B, T, C), dtype=jnp.float32)
    text_rem = jax.random.normal(k2, (B, T, C), dtype=jnp.float32)
    text_mas = jax.random.normal(k3, (B, T, C), dtype=jnp.float32)

    def make_target(k, zero_positions):
        lab = jax.random.randint(k, (B, T), 1, C, dtype=jnp.int32)
        pos = jnp.asarray(zero_positions, dtype=jnp.int32)          # (B,)
        cols = jnp.arange(T, dtype=jnp.int32)[None, :]
        return jnp.where(cols == pos[:, None], 0, lab)              # one 0 per row

    target = make_target(k4, [4, 7])      # batch[1]
    target_res = make_target(k5, [3, 6])  # batch[2]
    target_sub = make_target(k6, [2, 5])  # batch[3]

    pred = (text_pre, text_rem, text_mas, None)
    batch = (None, target, target_res, target_sub)

    out = visionlan_loss(pred, batch, training_step="LA")
    loss = jax.block_until_ready(out["loss"])

    ref = jax.block_until_ready(_ref_visionlan_loss(pred, batch))
    assert jnp.allclose(loss, ref, rtol=1e-5, atol=1e-5), (loss, ref)

    # quick LF_1 path smoke/correctness check too
    out1 = visionlan_loss(pred, batch, training_step="LF_1")
    loss1 = jax.block_until_ready(out1["loss"])
    ref1 = jax.block_until_ready(_ref_masked_ce(text_pre, target))
    assert jnp.allclose(loss1, ref1, rtol=1e-5, atol=1e-5), (loss1, ref1)

    print("KERNEL_OK")
</pallas_src>

<mosaic_0001>
module attributes {stable_mosaic.version = 11 : i64} {
  func.func @_ce_partial_kernel(%arg0: i32, %arg1: i32, %arg2: memref<1x16x128xf32, #tpu.memory_space<vmem>>, %arg3: memref<1x16x1xi32, #tpu.memory_space<vmem>>, %arg4: memref<1x1x8x128xf32, #tpu.memory_space<vmem>>, %arg5: memref<1x1x8x128xf32, #tpu.memory_space<vmem>>) attributes {dimension_semantics = [#tpu.dimension_semantics<parallel>, #tpu.dimension_semantics<parallel>], iteration_bounds = array<i64: 3, 1>, scalar_prefetch = 0 : i64, scratch_operands = 0 : i64, tpu.core_type = #tpu.core_type<tc>, window_params = [{transform_indices = @transform_0, window_bounds = array<i64: 1, 16, 128>}, {transform_indices = @transform_1, window_bounds = array<i64: 1, 16, 1>}, {transform_indices = @transform_2, window_bounds = array<i64: 1, 1, 8, 128>}, {transform_indices = @transform_3, window_bounds = array<i64: 1, 1, 8, 128>}]} {
    %c0 = arith.constant 0 : index
    %c0_0 = arith.constant 0 : index
    %c0_1 = arith.constant 0 : index
    %0 = vector.load %arg2[%c0, %c0_0, %c0_1] : memref<1x16x128xf32, #tpu.memory_space<vmem>>, vector<1x16x128xf32>
    %1 = vector.shape_cast %0 : vector<1x16x128xf32> to vector<16x128xf32>
    %c0_2 = arith.constant 0 : index
    %c0_3 = arith.constant 0 : index
    %c0_4 = arith.constant 0 : index
    %2 = vector.load %arg3[%c0_2, %c0_3, %c0_4] : memref<1x16x1xi32, #tpu.memory_space<vmem>>, vector<1x16x1xi32>
    %3 = vector.shape_cast %2 : vector<1x16x1xi32> to vector<16x1xi32>
    %c0_i32 = arith.constant 0 : i32
    %4 = vector.broadcast %c0_i32 : i32 to vector<16x1xi32>
    %5 = arith.cmpi sge, %3, %4 : vector<16x1xi32>
    %6 = arith.extui %5 : vector<16x1xi1> to vector<16x1xi32>
    %7 = arith.sitofp %6 : vector<16x1xi32> to vector<16x1xf32>
    %cst = arith.constant dense<0xFF800000> : vector<16xf32>
    %8 = vector.multi_reduction <maximumf>, %1, %cst [1] : vector<16x128xf32> to vector<16xf32>
    %9 = vector.shape_cast %8 : vector<16xf32> to vector<16x1xf32>
    %10 = vector.broadcast %9 : vector<16x1xf32> to vector<16x128xf32>
    %11 = arith.subf %1, %10 : vector<16x128xf32>
    %12 = math.exp %11 : vector<16x128xf32>
    %cst_5 = arith.constant dense<0.000000e+00> : vector<16xf32>
    %13 = vector.multi_reduction <add>, %12, %cst_5 [1] : vector<16x128xf32> to vector<16xf32>
    %14 = vector.shape_cast %13 : vector<16xf32> to vector<16x1xf32>
    %15 = math.log %14 : vector<16x1xf32>
    %16 = arith.addf %15, %9 : vector<16x1xf32>
    %17 = tpu.iota {dimensions = array<i32: 1>} : vector<16x128xi32>
    %18 = vector.broadcast %3 : vector<16x1xi32> to vector<16x128xi32>
    %19 = arith.cmpi eq, %17, %18 : vector<16x128xi32>
    %cst_6 = arith.constant 0.000000e+00 : f32
    %20 = vector.broadcast %cst_6 : f32 to vector<16x128xf32>
    %21 = arith.select %19, %1, %20 : vector<16x128xi1>, vector<16x128xf32>
    %cst_7 = arith.constant dense<0.000000e+00> : vector<16xf32>
    %22 = vector.multi_reduction <add>, %21, %cst_7 [1] : vector<16x128xf32> to vector<16xf32>
    %23 = vector.shape_cast %22 : vector<16xf32> to vector<16x1xf32>
    %24 = arith.subf %16, %23 : vector<16x1xf32>
    %25 = arith.mulf %24, %7 : vector<16x1xf32>
    %26 = vector.shape_cast %25 : vector<16x1xf32> to vector<1x16x1xf32>
    %cst_8 = arith.constant dense<0.000000e+00> : vector<1xf32>
    %27 = vector.multi_reduction <add>, %26, %cst_8 [1, 2] : vector<1x16x1xf32> to vector<1xf32>
    %28 = vector.shape_cast %27 : vector<1xf32> to vector<1x1x1xf32>
    %29 = vector.extract %28[0, 0, 0] : f32 from vector<1x1x1xf32>
    %30 = vector.shape_cast %7 : vector<16x1xf32> to vector<1x16x1xf32>
    %cst_9 = arith.constant dense<0.000000e+00> : vector<1xf32>
    %31 = vector.multi_reduction <add>, %30, %cst_9 [1, 2] : vector<1x16x1xf32> to vector<1xf32>
    %32 = vector.shape_cast %31 : vector<1xf32> to vector<1x1x1xf32>
    %33 = vector.extract %32[0, 0, 0] : f32 from vector<1x1x1xf32>
    %34 = vector.broadcast %29 : f32 to vector<1x1x8x128xf32>
    %c0_10 = arith.constant 0 : index
    %c0_11 = arith.constant 0 : index
    %c0_12 = arith.constant 0 : index
    %c0_13 = arith.constant 0 : index
    %35 = vector.load %arg4[%c0_10, %c0_11, %c0_12, %c0_13] : memref<1x1x8x128xf32, #tpu.memory_space<vmem>>, vector<1x1x8x128xf32>
    tpu.vector_store %arg4[%c0_10, %c0_11, %c0_12, %c0_13], %34 {strides = array<i32>} : memref<1x1x8x128xf32, #tpu.memory_space<vmem>>, vector<1x1x8x128xf32>,
    %36 = vector.broadcast %33 : f32 to vector<1x1x8x128xf32>
    %c0_14 = arith.constant 0 : index
    %c0_15 = arith.constant 0 : index
    %c0_16 = arith.constant 0 : index
    %c0_17 = arith.constant 0 : index
    %37 = vector.load %arg5[%c0_14, %c0_15, %c0_16, %c0_17] : memref<1x1x8x128xf32, #tpu.memory_space<vmem>>, vector<1x1x8x128xf32>
    tpu.vector_store %arg5[%c0_14, %c0_15, %c0_16, %c0_17], %36 {strides = array<i32>} : memref<1x1x8x128xf32, #tpu.memory_space<vmem>>, vector<1x1x8x128xf32>,
    return
  }
  func.func @transform_0(%arg0: i32, %arg1: i32) -> (i32, i32, i32) {
    %c0_i32 = arith.constant 0 : i32
    %c0_i32_0 = arith.constant 0 : i32
    return %arg0, %arg1, %c0_i32 : i32, i32, i32
  }
  func.func @transform_1(%arg0: i32, %arg1: i32) -> (i32, i32, i32) {
    %c0_i32 = arith.constant 0 : i32
    %c0_i32_0 = arith.constant 0 : i32
    return %arg0, %arg1, %c0_i32 : i32, i32, i32
  }
  func.func @transform_2(%arg0: i32, %arg1: i32) -> (i32, i32, i32, i32) {
    %c0_i32 = arith.constant 0 : i32
    %c0_i32_0 = arith.constant 0 : i32
    %c0_i32_1 = arith.constant 0 : i32
    return %arg0, %arg1, %c0_i32, %c0_i32_0 : i32, i32, i32, i32
  }
  func.func @transform_3(%arg0: i32, %arg1: i32) -> (i32, i32, i32, i32) {
    %c0_i32 = arith.constant 0 : i32
    %c0_i32_0 = arith.constant 0 : i32
    %c0_i32_1 = arith.constant 0 : i32
    return %arg0, %arg1, %c0_i32, %c0_i32_0 : i32, i32, i32, i32
  }
}

</mosaic_0001>

<bundles_post_ra>
// kernel: tpu_custom_call.1
= control target key start
LH: loop header
LB: loop body
LE: loop exit
PB: predicated region body
PF: predicated region fallthrough
CT: control target
= control target key end

     0   :  { %9 = vsyncpa [#allocation3], 0  ;;  %s879_s0 = inlined_call_operand.vmem [shape: f32[3,16,128], index: 0, kind: input, shape index: {}]   ;;  %s880_s1 = inlined_call_operand.vmem [shape: s32[3,16,1], index: 1, kind: input, shape index: {}]   ;;  %s881_s2 = inlined_call_operand.hbm [shape: f32[3,1,8,128], index: 2, kind: output, shape index: {0}]   ;;  %s882_s3 = inlined_call_operand.hbm [shape: f32[3,1,8,128], index: 3, kind: output, shape index: {1}]  }
   0x1   :  { %11 = vsyncpa [#allocation3 + $0x1], 0 }
   0x2   :  { %12 = vsyncpa [#allocation5], 0 }
   0x3   :  { %14 = vsyncpa [#allocation5 + $0x1], 0  ;;  %s719_s12 = smov 0   ;;  %s721_s13 = smov 0  }
   0x4   :  { %s723_s14 = smov 0   ;;  %s725_s15 = smov 0  }
   0x5   :  { %s727_s16 = smov 0   ;;  %s729_s17 = smov 0  }
   0x6 LB: > { %s486_s18 = sadd.s32 4294967295, %s693_s17   ;;  %s487_s19 = sadd.s32 4294967294, %s693_s17   ;;  %s693_s17 = sphi %s729_s17, %s20_s17   ;;  %s689_s16 = sphi %s727_s16, %s889_s16   ;;  %s685_s15 = sphi %s725_s15, %s888_s15   ;;  %s681_s14 = sphi %s723_s14, %s887_s14   ;;  %s677_s13 = sphi %s721_s13, %s886_s13   ;;  %s673_s12 = sphi %s719_s12, %s885_s12  }
   0x7   : > { %s32_s20 = sadd.s32 1, %s689_s16  ;;  %s97_s21 = sadd.s32 1, %s681_s14 }
   0x8   : > { %p34_p0 = scmp.ge.s32.totalorder %s32_s20, 3  ;;  %p107_p1 = scmp.ne.s32.totalorder %s681_s14, %s677_s13 }
   0x9   : > { %p108_p2 = scmp.eq.s32.totalorder %s486_s18, 2  ;;  %p113_p3 = scmp.ne.s32.totalorder %s677_s13, %s673_s12 }
   0xa   : > { %s891_s20 = smov (%p34_p0, %s32_s20), 0  ;;  %p114_p5 = scmp.eq.s32.totalorder %s487_s19, 2 }
   0xb   : > { %p759_p4 = por %p108_p2, %p107_p1  ;;  %s92_s23 = ssub.s32 %s689_s16, %s891_s20 }
   0xc   : > { %p490_p6 = scmp.ge.s32.totalorder %s693_s17, 1  ;;  %p95_p7 = scmp.eq.s32.totalorder %s92_s23, 0 }
   0xd   : > { %p766_p8 = por %p114_p5, %p113_p3  ;;  %p186_p9 = scmp.lt.s32.totalorder %s693_s17, 4 }
   0xe   : > { %s772_s25 = scalar_select %p95_p7, %s681_s14, %s97_s21  }
   0xf   : > { %p187_p10 = pnand %p490_p6, %p186_p9 }
  0x10   : > { %p229_p11 = scmp.lt.s32.totalorder (!%p187_p10), %s685_s15, 2  ;;  %v695_v0 = vmov (!%p187_p10), 0   ;;  %v278_v10 = vlaneseq (!%p187_p10)  ;;  %v696_v19 = vmov (!%p187_p10), 0.0   ;;  %vm298_vm4 = vcmask (!%p187_p10), 7168   ;;  %s787_s7 = sand.u32 (!%p187_p10), 1, %s677_s13  }
  0x11   : > { %190 = sbr.rel (%p187_p10) target bundleno = 597 (0x255), region = 28  ;;  %573 = vset.pattern.permute.xlu1 (!%p187_p10), %v695_v0  ;;  %574 = vset.pattern.permute.xlu0 (!%p187_p10), %v695_v0  ;;  %s491_s8 = sshll.u32 (!%p187_p10), %s787_s7, 3 }
  0x12   : > { %v279_v13 = vand.u32 (!%p187_p10), 127, %v278_v10  ;;  %s501_s9 = sshll.u32 (!%p187_p10), %s685_s15, 7  ;;  %s220_s10 = scalar_lea.vmem (!%p187_p10), [#allocation2], %s491_s8 }
  0x13   : > { %s347_s11 = sshll.u32 (!%p187_p10), %s220_s10, 4  ;;  %s791_s18 = scalar_lea.vmem (!%p187_p10), [#allocation4], %s491_s8  ;;  %s801_s11 = int_to_ptr.vmem [resolvable:$true] %s347_s11 }
  0x14   : > { %s361_s19 = sshll.u32 (!%p187_p10), %s791_s18, 4  ;;  %s328_s28 = scalar_lea.sflag (!%p187_p10), [#allocation3], %s787_s7  ;;  %s803_s19 = int_to_ptr.vmem [resolvable:$true] %s361_s19 }
  0x15   : > { %s583_s29 = scalar_lea.vmem (!%p187_p10), %s801_s11, 128 }
  0x16   : > { %p584_p12 = scmp.ne.s32.totalorder (!%p187_p10), %s801_s11, %s583_s29 }
  0x18   : > { %s230_s26 = scalar_select %p229_p11, %s685_s15, 2 }
  0x19   : > { %p585_p13 = pnand %p584_p12, %p759_p4 }
  0x1a   : > { %s505_s27 = sshll.u32 %s230_s26, 4  ;;  %s799_s26 = scalar_lea.hbm %s881_s2, %s501_s9 }
  0x1b   : > { %s236_s30 = scalar_lea.vmem %s879_s0, %s505_s27  ;;  %s246_s6 = scalar_lea.vmem %s880_s1, %s505_s27 }
  0x1c   : > { %v248_v1 = vld [vmem:[%s236_s30] sm:$0xff]  ;;  %v249_v3 = vld [vmem:[%s236_s30 + $0x8] sm:$0xff]  ;;  %p586_p0 = pneg %p585_p13  ;;  %s697_s30 = smov [#allocation2]  }
  0x1d   : > { %v250_v2 = vld [vmem:[%s246_s6] sm:$0xff]  ;;  %258 = vmax.xlane.f32.xlu0 %v248_v1  ;;  %v251_v4 = vld [vmem:[%s246_s6 + $0x8] sm:$0xff]  ;;  %s587_s4 = sshll.u32 %s697_s30, 4  ;;  %s588_s4 = int_to_ptr.vmem [resolvable:$false] %s587_s4 }
  0x1e   : > { %281 = vperm.xlu1 %573, %v250_v2   ;;  %vm252_vm2 = vcmp.ge.s32.totalorder %v250_v2, 0  ;;  %vm253_vm3 = vcmp.ge.s32.totalorder %v251_v4, 0  ;;  %s589_s5 = scalar_lea.vmem %s588_s4, 256  ;;  %p590_p1 = scmp.lt.s32.totalorder %s801_s11, %s588_s4 }
  0x1f   : > { %v497_v20 = vsel %vm252_vm2, 1.0, %v696_v19  ;;  %v498_v21 = vsel %vm253_vm3, 1.0, %v696_v19  ;;  %p591_p2 = scmp.lt.s32.totalorder %s589_s5, %s583_s29 }
  0x20   : > { %v311_v22 = vsel %vm298_vm4, %v497_v20, 0.0  ;;  %v312_v23 = vsel %vm298_vm4, %v498_v21, 0.0 }
  0x21   : > { %260 = vmax.xlane.f32.xlu0 %v249_v3  ;;  %v313_v24 = vadd.f32 %v312_v23, %v311_v22  ;;  %p592_p3 = por %p591_p2, %p590_p1 }
  0x22   : > { %284 = vperm.xlu1 %573, %v251_v4  }
  0x23   : > { %p593_p5 = pnand %p592_p3, %p586_p0 }
  0x9d   : > { %v282_v12 = vpop.permute.xlu1 %281 }
  0x9e   : > { %vm286_vm0 = vcmp.eq.s32.totalorder %v279_v13, %v282_v12 }
  0x9f   : > { %v288_v16 = vsel %vm286_vm0, %v248_v1, 0.0 }
  0xa1   : > { %v285_v15 = vpop.permute.xlu1 %284 }
  0xa2   : > { %vm287_vm1 = vcmp.eq.s32.totalorder %v279_v13, %v285_v15 }
  0xa3   : > { %v289_v18 = vsel %vm287_vm1, %v249_v3, 0.0 }
  0xaa   : > { %v259_v5 = vpop.xlane.xlu0 %258 }
  0xab   : > { %v262_v6 = vsub.f32 %v248_v1, %v259_v5 }
  0xad   : > { %v264_v7 = vmul.f32 1.442695, %v262_v6 }
  0xae   : > { %v261_v8 = vpop.xlane.xlu0 %260 }
  0xaf   : > { %575 = vpow2.f32 %v264_v7  ;;  %v263_v9 = vsub.f32 %v249_v3, %v261_v8 }
  0xb1   : > { %v266_v11 = vmul.f32 1.442695, %v263_v9 }
  0xb3   : > { %577 = vpow2.f32 %v266_v11 }
  0xb9   : > { %v576_v14 = vpop.eup %575 }
  0xba   : > { %268 = vadd.xlane.f32.xlu0 %v576_v14 }
  0xbd   : > { %v578_v17 = vpop.eup %577 }
  0xbe   : > { %270 = vadd.xlane.f32.xlu1 %v578_v17  ;;  %290 = vadd.xlane.f32.xlu0 %v288_v16 }
  0xc2   : > { %292 = vadd.xlane.f32.xlu0 %v289_v18 }
 0x147   : > { %v269_v25 = vpop.xlane.xlu0 %268 }
 0x148   : > { %579 = vlog2.f32 %v269_v25 }
 0x14b   : > { %v271_v26 = vpop.xlane.xlu1 %270  ;;  %v291_v29 = vpop.xlane.xlu0 %290 }
 0x14c   : > { %581 = vlog2.f32 %v271_v26 }
 0x14f   : > { %v293_v35 = vpop.xlane.xlu0 %292 }
 0x152   : > { %v580_v27 = vpop.eup %579 }
 0x153   : > { %v273_v28 = vmul.f32 0.6931472, %v580_v27 }
 0x155   : > { %v276_v30 = vadd.f32 %v273_v28, %v259_v5 }
 0x156   : > { %v582_v31 = vpop.eup %581 }
 0x157   : > { %v275_v32 = vmul.f32 0.6931472, %v582_v31  ;;  %v294_v33 = vsub.f32 %v276_v30, %v291_v29 }
 0x159   : > { %v277_v34 = vadd.f32 %v275_v32, %v261_v8  ;;  %v296_v36 = vmul.f32 %v497_v20, %v294_v33 }
 0x15b   : > { %v295_v37 = vsub.f32 %v277_v34, %v293_v35  ;;  %v299_v39 = vsel %vm298_vm4, %v296_v36, 0.0 }
 0x15d   : > { %v297_v38 = vmul.f32 %v498_v21, %v295_v37 }
 0x15f   : > { %v300_v40 = vsel %vm298_vm4, %v297_v38, 0.0 }
 0x160   : > { %v301_v41 = vadd.f32 %v300_v40, %v299_v39 }
 0x162   : > { %302 = vadd.xlane.f32.xlu0 %v301_v41 }
 0x166   : > { %314 = vadd.xlane.f32.xlu0 %v313_v24 }
 0x1ef   : > { %v303_v42 = vpop.xlane.xlu0 %302 }
 0x1f0   : > { %v304_v43 = vrot.slane %v303_v42, 4 }
 0x1f2   : > { %v305_v44 = vadd.f32 %v304_v43, %v303_v42 }
 0x1f3   : > { %v315_v45 = vpop.xlane.xlu0 %314 }
 0x1f4   : > { %v306_v46 = vrot.slane %v305_v44, 2  ;;  %v316_v47 = vrot.slane %v315_v45, 4 }
 0x1f6   : > { %v317_v48 = vadd.f32 %v316_v47, %v315_v45  ;;  %v307_v49 = vadd.f32 %v306_v46, %v305_v44 }
 0x1f8   : > { %v318_v50 = vrot.slane %v317_v48, 2  ;;  %v308_v51 = vrot.slane %v307_v49, 1 }
 0x1fa   : > { %v319_v52 = vadd.f32 %v318_v50, %v317_v48  ;;  %v309_v53 = vadd.f32 %v308_v51, %v307_v49 }
 0x1fc   : > { %507 = vpush %v309_v53  ;;  %v320_v54 = vrot.slane %v319_v52, 1 }
 0x1fe   : > { %v321_v55 = vadd.f32 %v320_v54, %v319_v52 }
 0x200   : > { %509 = vpush %v321_v55 }
 0x22d   : > { %s508_s27 = spop %507 }
 0x22e   : > { %v323_v56 = vstv %s508_s27 }
 0x22f   : > { %324 = vst [vmem:[%s220_s10] sm:$0xff] %v323_v56 }
 0x230   : > { %596 = shalt.err (!%p593_p5)
}
 0x231   : > { %s597_s6 = scalar_lea.hbm %s799_s26, 128  ;;  %s601_s21 = scalar_lea.hbm %s881_s2, 384 }
 0x232   : > { %p598_p6 = scmp.ne.s32.totalorder %s799_s26, %s597_s6  ;;  %p602_p10 = scmp.lt.u32.totalorder %s799_s26, %s881_s2 }
 0x233   : > { %p603_p11 = scmp.lt.u32.totalorder %s601_s21, %s597_s6  ;;  %p605_p13 = scmp.lt.u32.totalorder %s597_s6, %s799_s26 }
 0x234   : > { %p599_p7 = pnand %p598_p6, %p759_p4 }
 0x235   : > { %p604_p12 = por %p603_p11, %p602_p10 }
 0x236   : > { %p600_p9 = pneg %p599_p7 }
 0x237   : > { %p606_p0 = por %p605_p13, %p604_p12 }
 0x239   : > { %p607_p1 = pnand %p606_p0, %p600_p9 }
 0x23b   : > { %610 = shalt.err (!%p607_p1)
}
 0x23c   : > { %511 = dma.vmem_to_hbm [thread:$0]  (%p759_p4), %s801_s11, 128, %s799_s26, %s328_s28  }
 0x23d   : > { %s510_s29 = spop %509  ;;  %s832_s5 = scalar_lea.hbm %s882_s3, %s501_s9 }
 0x23e   : > { %v325_v57 = vstv %s510_s29  ;;  %s333_s6 = scalar_lea.sflag [#allocation5], %s787_s7  ;;  %s611_s8 = scalar_lea.vmem %s803_s19, 128 }
 0x23f   : > { %326 = vst [vmem:[%s791_s18] sm:$0xff] %v325_v57  ;;  %p612_p2 = scmp.ne.s32.totalorder %s803_s19, %s611_s8  ;;  %s698_s10 = smov [#allocation4]  }
 0x240   : > { %s615_s21 = sshll.u32 %s698_s10, 4  ;;  %s616_s21 = int_to_ptr.vmem [resolvable:$false] %s615_s21 }
 0x241   : > { %p613_p3 = pnand %p612_p2, %p759_p4  ;;  %s617_s23 = scalar_lea.vmem %s616_s21, 256 }
 0x242   : > { %p618_p6 = scmp.lt.s32.totalorder %s803_s19, %s616_s21  ;;  %p619_p7 = scmp.lt.s32.totalorder %s617_s23, %s611_s8 }
 0x243   : > { %p614_p5 = pneg %p613_p3 }
 0x244   : > { %p620_p9 = por %p619_p7, %p618_p6 }
 0x246   : > { %p621_p10 = pnand %p620_p9, %p614_p5 }
 0x248   : > { %624 = shalt.err (!%p621_p10)
}
 0x249   : > { %s625_s15 = scalar_lea.hbm %s832_s5, 128  ;;  %s629_s11 = scalar_lea.hbm %s882_s3, 384 }
 0x24a   : > { %p626_p11 = scmp.ne.s32.totalorder %s832_s5, %s625_s15  ;;  %p630_p0 = scmp.lt.u32.totalorder %s832_s5, %s882_s3 }
 0x24b   : > { %p631_p1 = scmp.lt.u32.totalorder %s629_s11, %s625_s15  ;;  %p633_p3 = scmp.lt.u32.totalorder %s625_s15, %s832_s5 }
 0x24c   : > { %p627_p12 = pnand %p626_p11, %p759_p4 }
 0x24d   : > { %p632_p2 = por %p631_p1, %p630_p0 }
 0x24e   : > { %p628_p13 = pneg %p627_p12 }
 0x24f   : > { %p634_p5 = por %p633_p3, %p632_p2 }
 0x251   : > { %p635_p6 = pnand %p634_p5, %p628_p13 }
 0x253   : > { %638 = shalt.err (!%p635_p6)
}
 0x254   : > { %512 = dma.vmem_to_hbm [thread:$0]  (%p759_p4), %s803_s19, 128, %s832_s5, %s333_s6  }
 0x255 PF: > { %p522_p7 = scmp.ge.s32.totalorder %s693_s17, 2  ;;  %s373_s28 = sand.u32 1, %s673_s12  }
 0x256   : > { %s374_s27 = scalar_lea.sflag [#allocation3], %s373_s28 }
 0x257   : > { %p516_p9 = pnand %p522_p7, %p766_p8 }
 0x259   : > { %664 = dma.done.wait (!%p516_p9), %s374_s27, 128  }
 0x25a   : > { %666 = vsyncadd (!%p516_p9), %s374_s27, 4294967168  ;;  %s383_s29 = scalar_lea.sflag [#allocation5], %s373_s28 }
 0x25b   : > { %668 = dma.done.wait (!%p516_p9), %s383_s29, 128  }
 0x25c   : > { %670 = vsyncadd (!%p516_p9), %s383_s29, 4294967168  ;;  %s20_s17 = sadd.s32 1, %s693_s17   ;;  %s885_s12 = smov %s677_s13 }
 0x25d   : > { %p17_p10 = scmp.ge.s32.totalorder %s20_s17, 5   ;;  %s886_s13 = smov %s681_s14 }
 0x25e   : > { %s887_s14 = smov %s772_s25  ;;  %s888_s15 = smov %s689_s16 }
 0x25f   : > { %s889_s16 = smov %s891_s20  ;;  %19 = sbr.rel (!%p17_p10) target bundleno = 6 (0x6), region = 83 }
 0x266   :  { %388 = vsyncpa [#allocation3], 1 }
 0x267   :  { %390 = vsyncpa [#allocation3 + $0x1], 1 }
 0x268   :  { %391 = vsyncpa [#allocation5], 1 }
 0x269   :  { %393 = vsyncpa [#allocation5 + $0x1], 1 }

</bundles_post_ra>
